<compile_context>
chip_gen: v7x
topology: tpu7x:2x2x1
jax: 0.10.0
libtpu: 0.0.40
codegen_flags: <defaults>
</compile_context>

<pallas_src>
import jax
import jax.numpy as jnp
from jax.experimental import pallas as pl
from jax.experimental.pallas import tpu as pltpu

LANE = 128
SUBLANE = 8
_TARGET_BLOCK_BYTES = 2 * 1024 * 1024   # per-input streaming block (v5e-safe; 4 MiB ok on v6e/v7x)
_VMEM_LIMIT_BYTES = 40 * 1024 * 1024    # headroom for blocks + elementwise temporaries
_JNP_FALLBACK_ELEMS = 1024              # below this, a plain XLA reduction beats a kernel launch


def _cdiv(a, b):
    return -(-a // b)


def _single_block_kernel(p_ref, t_ref, out_ref):
    """Whole problem fits in one VMEM block: one-shot fused reduction."""
    d = p_ref[...].astype(jnp.float32) - t_ref[...].astype(jnp.float32)
    out_ref[0, 0] = jnp.sum(d * d)
    out_ref[0, 1] = jnp.sum(jnp.abs(d))


def _make_streaming_kernel(steps, block_rows, total_rows, need_mask):
    """Streaming reduction over grid (num_splits [parallel], steps [arbitrary]).

    Accumulates into a single (8, 128) VMEM tile per quantity; the cross-lane
    reduce to a scalar happens once per split, at the last step.
    """
    last_step = steps - 1

    def kernel(p_ref, t_ref, out_ref, acc_sq, acc_abs):
        i = pl.program_id(1)

        @pl.when(i == 0)
        def _init():
            acc_sq[...] = jnp.zeros_like(acc_sq)
            acc_abs[...] = jnp.zeros_like(acc_abs)

        d = p_ref[...].astype(jnp.float32) - t_ref[...].astype(jnp.float32)

        def _accumulate(dv):
            # Leading-axis sum over (block_rows//8, 8, 128): pure VALU vreg adds.
            acc_sq[...] += jnp.sum((dv * dv).reshape(-1, SUBLANE, LANE), axis=0)
            acc_abs[...] += jnp.sum(jnp.abs(dv).reshape(-1, SUBLANE, LANE), axis=0)

        if need_mask:
            # Logical (unclamped) block id; the index_map clamps the DMA so the
            # fetched window is always in-bounds, and we zero out any rows that
            # lie beyond the true row count (ragged edge block and phantom
            # blocks introduced by splitting the grid across 2 cores).
            gblk = pl.program_id(0) * steps + i
            rows_left = total_rows - gblk * block_rows
            is_full = rows_left >= block_rows

            @pl.when(is_full)
            def _full():
                _accumulate(d)

            @pl.when(jnp.logical_not(is_full))
            def _edge():
                row_ids = jax.lax.broadcasted_iota(jnp.int32, (block_rows, LANE), 0)
                _accumulate(jnp.where(row_ids < rows_left, d, 0.0))
        else:
            _accumulate(d)

        @pl.when(i == last_step)
        def _finalize():
            out_ref[0, 0] = jnp.sum(acc_sq[...])
            out_ref[0, 1] = jnp.sum(acc_abs[...])

    return kernel


def fielding_loss(predictions, targets, penalty_weight=0.5):
    """Pallas TPU implementation of FieldingLoss.forward."""
    assert predictions.shape == targets.shape
    n = int(predictions.size)
    assert n > 0

    if n < _JNP_FALLBACK_ELEMS:
        # Kernel-launch overhead dominates for a few KB; use fused XLA directly.
        d = predictions.astype(jnp.float32) - targets.astype(jnp.float32)
        return jnp.mean(d * d) + penalty_weight * jnp.mean(jnp.abs(d))

    itemsize = jnp.dtype(predictions.dtype).itemsize
    pack = max(1, 4 // itemsize)              # elems per 32-bit word (f32:1, bf16:2, i8:4)
    sub_mult = SUBLANE * pack                 # packed sublane multiple (8 / 16 / 32)
    max_block_rows = max(_TARGET_BLOCK_BYTES // (LANE * itemsize), sub_mult)
    max_block_rows -= max_block_rows % sub_mult

    p_flat = predictions.reshape(-1)
    t_flat = targets.reshape(-1)

    rows = _cdiv(n, LANE)
    if n % LANE != 0:
        # TODO(synk): a sub-128 ragged tail still requires a pad copy here;
        # if this path ever gets hot, compute the <128-elem tail with a tiny
        # jnp sum (or raw-HBM DMA) instead of copying the whole tensor.
        pad = rows * LANE - n
        p_flat = jnp.pad(p_flat, (0, pad))
        t_flat = jnp.pad(t_flat, (0, pad))
    p2d = p_flat.reshape(rows, LANE)          # metadata-only reshape, no copy
    t2d = t_flat.reshape(rows, LANE)

    cost = pl.CostEstimate(flops=5 * n, transcendentals=0,
                           bytes_accessed=2 * n * itemsize + 64)

    if rows <= max_block_rows:
        # Single block equal to the full array dims (always a legal block shape,
        # no alignment padding, no masking needed).
        partials = pl.pallas_call(
            _single_block_kernel,
            out_shape=jax.ShapeDtypeStruct((1, 2), jnp.float32),
            grid_spec=pltpu.PrefetchScalarGridSpec(
                num_scalar_prefetch=0,
                grid=(1,),
                in_specs=[pl.BlockSpec((rows, LANE), lambda i: (0, 0)),
                          pl.BlockSpec((rows, LANE), lambda i: (0, 0))],
                out_specs=pl.BlockSpec((1, 2), lambda i: (0, 0),
                                       memory_space=pltpu.SMEM)),
            compiler_params=pltpu.CompilerParams(
                dimension_semantics=("arbitrary",),
                vmem_limit_bytes=_VMEM_LIMIT_BYTES),
            cost_estimate=cost,
        )(p2d, t2d)
    else:
        block_rows = max_block_rows
        total_blocks = _cdiv(rows, block_rows)
        # Use 2 "parallel" splits whenever there are >= 2 blocks of work
        # (both v7x TensorCores; harmless on single-TC chips).
        num_splits = 2 if total_blocks >= 2 else 1
        steps = _cdiv(total_blocks, num_splits)
        # Masking is needed if the grid covers more rows than exist (ragged last
        # block and/or phantom blocks from the uneven split).
        need_mask = (num_splits * steps * block_rows) != rows
        last_blk = total_blocks - 1

        def in_map(s, i):
            # Clamp so phantom grid steps re-fetch the last real block (their
            # contribution is fully masked to zero inside the kernel).
            return (jnp.minimum(s * steps + i, last_blk), 0)

        kernel = _make_streaming_kernel(steps, block_rows, rows, need_mask)
        partials = pl.pallas_call(
            kernel,
            out_shape=jax.ShapeDtypeStruct((num_splits, 2), jnp.float32),
            grid_spec=pltpu.PrefetchScalarGridSpec(
                num_scalar_prefetch=0,
                grid=(num_splits, steps),
                in_specs=[pl.BlockSpec((block_rows, LANE), in_map),
                          pl.BlockSpec((block_rows, LANE), in_map)],
                out_specs=pl.BlockSpec((1, 2), lambda s, i: (s, 0),
                                       memory_space=pltpu.SMEM),
                scratch_shapes=[pltpu.VMEM((SUBLANE, LANE), jnp.float32),
                                pltpu.VMEM((SUBLANE, LANE), jnp.float32)]),
            compiler_params=pltpu.CompilerParams(
                dimension_semantics=("parallel", "arbitrary"),
                vmem_limit_bytes=_VMEM_LIMIT_BYTES),
            cost_estimate=cost,
        )(p2d, t2d)

    # Final combine (+ penalty_weight, / n) in plain JAX: merges the per-split
    # partials and never forces a kernel recompile when penalty_weight changes.
    sum_sq = jnp.sum(partials[:, 0])
    sum_abs = jnp.sum(partials[:, 1])
    return (sum_sq + penalty_weight * sum_abs) / n


def _reference(predictions, targets, penalty_weight):
    d = predictions.astype(jnp.float32) - targets.astype(jnp.float32)
    return jnp.mean(d * d) + penalty_weight * jnp.mean(jnp.abs(d))


if __name__ == "__main__":
    key = jax.random.PRNGKey(0)
    penalty_weight = 0.5
    ks = jax.random.split(key, 10)

    # 1) Primary small fielding-head shape: single-block kernel path, no padding.
    p1 = jax.random.normal(ks[0], (2, 4, 16, 16), dtype=jnp.float32)
    t1 = jax.random.normal(ks[1], (2, 4, 16, 16), dtype=jnp.float32)
    loss1 = jax.block_until_ready(fielding_loss(p1, t1, penalty_weight))
    ref1 = _reference(p1, t1, penalty_weight)
    assert jnp.allclose(loss1, ref1, rtol=1e-5, atol=1e-5), (loss1, ref1)

    # 2) Row count not a multiple of 8 (block == full array dims escape hatch).
    p2 = jax.random.normal(ks[2], (2, 3, 16, 16), dtype=jnp.float32)
    t2 = jax.random.normal(ks[3], (2, 3, 16, 16), dtype=jnp.float32)
    loss2 = jax.block_until_ready(fielding_loss(p2, t2, penalty_weight))
    ref2 = _reference(p2, t2, penalty_weight)
    assert jnp.allclose(loss2, ref2, rtol=1e-5, atol=1e-5), (loss2, ref2)

    # 3) Multi-block streaming path with a ragged edge block, a phantom block
    #    from the 2-way split, and no wrapper-side padding.
    p3 = jax.random.normal(ks[4], (16, 8, 128, 130), dtype=jnp.float32)
    t3 = jax.random.normal(ks[5], (16, 8, 128, 130), dtype=jnp.float32)
    loss3 = jax.block_until_ready(fielding_loss(p3, t3, penalty_weight))
    ref3 = _reference(p3, t3, penalty_weight)
    assert jnp.allclose(loss3, ref3, rtol=1e-4, atol=1e-5), (loss3, ref3)

    # 4) Element count not a multiple of 128 (tiny tail-pad path).
    p4 = jax.random.normal(ks[6], (3, 7, 11, 13), dtype=jnp.float32)
    t4 = jax.random.normal(ks[7], (3, 7, 11, 13), dtype=jnp.float32)
    loss4 = jax.block_until_ready(fielding_loss(p4, t4, penalty_weight))
    ref4 = _reference(p4, t4, penalty_weight)
    assert jnp.allclose(loss4, ref4, rtol=1e-5, atol=1e-5), (loss4, ref4)

    # 5) Tiny input: plain-XLA fallback path.
    p5 = jax.random.normal(ks[8], (2, 2, 5, 5), dtype=jnp.float32)
    t5 = jax.random.normal(ks[9], (2, 2, 5, 5), dtype=jnp.float32)
    loss5 = jax.block_until_ready(fielding_loss(p5, t5, penalty_weight))
    ref5 = _reference(p5, t5, penalty_weight)
    assert jnp.allclose(loss5, ref5, rtol=1e-5, atol=1e-5), (loss5, ref5)

    print("KERNEL_OK")
</pallas_src>

<mosaic_0001>
module attributes {stable_mosaic.version = 11 : i64} {
  func.func @_single_block_kernel(%arg0: i32, %arg1: memref<16x128xf32, #tpu.memory_space<vmem>>, %arg2: memref<16x128xf32, #tpu.memory_space<vmem>>, %arg3: memref<1x2xf32, #tpu.memory_space<smem>>) attributes {dimension_semantics = [#tpu.dimension_semantics<arbitrary>], iteration_bounds = array<i64: 1>, scalar_prefetch = 0 : i64, scratch_operands = 0 : i64, tpu.core_type = #tpu.core_type<tc>, window_params = [{pipeline_mode = #tpu.pipeline_mode<synchronous>, transform_indices = @transform_0, window_bounds = array<i64: 16, 128>}, {pipeline_mode = #tpu.pipeline_mode<synchronous>, transform_indices = @transform_1, window_bounds = array<i64: 16, 128>}, {transform_indices = @transform_2, window_bounds = array<i64: 1, 2>}]} {
    %c0 = arith.constant 0 : index
    %c0_0 = arith.constant 0 : index
    %0 = vector.load %arg1[%c0, %c0_0] : memref<16x128xf32, #tpu.memory_space<vmem>>, vector<16x128xf32>
    %c0_1 = arith.constant 0 : index
    %c0_2 = arith.constant 0 : index
    %1 = vector.load %arg2[%c0_1, %c0_2] : memref<16x128xf32, #tpu.memory_space<vmem>>, vector<16x128xf32>
    %2 = arith.subf %0, %1 : vector<16x128xf32>
    %3 = arith.mulf %2, %2 : vector<16x128xf32>
    %4 = vector.shape_cast %3 : vector<16x128xf32> to vector<1x16x128xf32>
    %cst = arith.constant dense<0.000000e+00> : vector<1xf32>
    %5 = vector.multi_reduction <add>, %4, %cst [1, 2] : vector<1x16x128xf32> to vector<1xf32>
    %6 = vector.shape_cast %5 : vector<1xf32> to vector<1x1x1xf32>
    %7 = vector.extract %6[0, 0, 0] : f32 from vector<1x1x1xf32>
    %c0_3 = arith.constant 0 : index
    %c0_4 = arith.constant 0 : index
    %8 = memref.load %arg3[%c0_3, %c0_4] : memref<1x2xf32, #tpu.memory_space<smem>>
    memref.store %7, %arg3[%c0_3, %c0_4] : memref<1x2xf32, #tpu.memory_space<smem>>
    %9 = math.absf %2 : vector<16x128xf32>
    %10 = vector.shape_cast %9 : vector<16x128xf32> to vector<1x16x128xf32>
    %cst_5 = arith.constant dense<0.000000e+00> : vector<1xf32>
    %11 = vector.multi_reduction <add>, %10, %cst_5 [1, 2] : vector<1x16x128xf32> to vector<1xf32>
    %12 = vector.shape_cast %11 : vector<1xf32> to vector<1x1x1xf32>
    %13 = vector.extract %12[0, 0, 0] : f32 from vector<1x1x1xf32>
    %c0_6 = arith.constant 0 : index
    %c1 = arith.constant 1 : index
    %14 = memref.load %arg3[%c0_6, %c1] : memref<1x2xf32, #tpu.memory_space<smem>>
    memref.store %13, %arg3[%c0_6, %c1] : memref<1x2xf32, #tpu.memory_space<smem>>
    return
  }
  func.func @transform_0(%arg0: i32) -> (i32, i32) {
    %c0_i32 = arith.constant 0 : i32
    %c0_i32_0 = arith.constant 0 : i32
    %c0_i32_1 = arith.constant 0 : i32
    return %c0_i32, %c0_i32_0 : i32, i32
  }
  func.func @transform_1(%arg0: i32) -> (i32, i32) {
    %c0_i32 = arith.constant 0 : i32
    %c0_i32_0 = arith.constant 0 : i32
    %c0_i32_1 = arith.constant 0 : i32
    return %c0_i32, %c0_i32_0 : i32, i32
  }
  func.func @transform_2(%arg0: i32) -> (i32, i32) {
    %c0_i32 = arith.constant 0 : i32
    %c0_i32_0 = arith.constant 0 : i32
    %c0_i32_1 = arith.constant 0 : i32
    return %c0_i32, %c0_i32_0 : i32, i32
  }
}

</mosaic_0001>

<bundles_post_ra>
// kernel: tpu_custom_call.1
= control target key start
LH: loop header
LB: loop body
LE: loop exit
PB: predicated region body
PF: predicated region fallthrough
CT: control target
= control target key end

     0   :  { %7 = vsyncpa [#allocation3], 0  ;;  %s214_s0 = inlined_call_operand.hbm [shape: f32[16,128], index: 0, kind: input, shape index: {}]   ;;  %s215_s1 = inlined_call_operand.hbm [shape: f32[16,128], index: 1, kind: input, shape index: {}]   ;;  %s216_s2 = inlined_call_operand.hbm [shape: f32[1,2], index: 2, kind: output, shape index: {}]  }
   0x1   :  { %8 = vsyncpa [#allocation6], 0 }
   0x2   :  { %9 = vsyncpa [#allocation4], 0  ;;  %s158_s9 = smov [#allocation2]   ;;  %s98_s13 = scalar_lea.hbm %s214_s0, 256 }
   0x3   :  { %s15_s10 = sshll.u32 %s158_s9, 4  ;;  %p99_p0 = scmp.ne.s32.totalorder %s214_s0, %s98_s13  ;;  %s16_s10 = int_to_ptr.vmem [resolvable:$true] %s15_s10 }
   0x4   :  { %p102_p1 = scmp.lt.u32.totalorder %s98_s13, %s214_s0 }
   0x6   :  { %p104_p2 = pnand %p102_p1, %p99_p0 }
   0x8   :  { %107 = shalt.err (!%p104_p2)
}
   0x9   :  { %s108_s18 = scalar_lea.vmem %s16_s10, 256  ;;  %p113_p4 = scmp.lt.s32.totalorder %s16_s10, %s16_s10 }
   0xa   :  { %p109_p3 = scmp.ne.s32.totalorder %s16_s10, %s108_s18  ;;  %p114_p5 = scmp.lt.s32.totalorder %s108_s18, %s108_s18 }
   0xc   :  { %p115_p6 = por %p114_p5, %p113_p4 }
   0xe   :  { %p116_p7 = pnand %p115_p6, %p109_p3 }
  0x10   :  { %119 = shalt.err (!%p116_p7)
}
  0x11   :  { %s159_s19 = smov 128   ;;  %s160_s20 = smov 8  }
  0x12   :  { %21 = dma.hbm_to_vmem [thread:$0]  %s214_s0, 256, %s16_s10, [#allocation3], %s159_s19, %s159_s19, %s160_s20  }
  0x13   :  { %s161_s23 = smov [#allocation5]   ;;  %s120_s27 = scalar_lea.hbm %s215_s1, 256 }
  0x14   :  { %s27_s24 = sshll.u32 %s161_s23, 4  ;;  %p121_p8 = scmp.ne.s32.totalorder %s215_s1, %s120_s27  ;;  %s28_s24 = int_to_ptr.vmem [resolvable:$true] %s27_s24 }
  0x15   :  { %p124_p9 = scmp.lt.u32.totalorder %s120_s27, %s215_s1 }
  0x17   :  { %p126_p10 = pnand %p124_p9, %p121_p8 }
  0x19   :  { %129 = shalt.err (!%p126_p10)
}
  0x1a   :  { %s130_s4 = scalar_lea.vmem %s28_s24, 256  ;;  %p135_p12 = scmp.lt.s32.totalorder %s28_s24, %s28_s24 }
  0x1b   :  { %p131_p11 = scmp.ne.s32.totalorder %s28_s24, %s130_s4  ;;  %p136_p13 = scmp.lt.s32.totalorder %s130_s4, %s130_s4 }
  0x1d   :  { %p137_p0 = por %p136_p13, %p135_p12 }
  0x1f   :  { %p138_p1 = pnand %p137_p0, %p131_p11 }
  0x21   :  { %141 = shalt.err (!%p138_p1)
}
  0x22   :  { %33 = dma.hbm_to_vmem [thread:$0]  %s215_s1, 256, %s28_s24, [#allocation6], %s159_s19, %s159_s19, %s160_s20  }
  0x23   :  { %152 = dma.done.wait [#allocation3], 256  }
  0x24   :  { %153 = vsyncadd [#allocation3], 4294967040 }
  0x25   :  { %154 = dma.done.wait [#allocation6], 256  }
  0x26   :  { %155 = vsyncadd [#allocation6], 4294967040  ;;  %v40_v0 = vld [vmem:[#allocation2] sm:$0xff]  ;;  %v41_v1 = vld [vmem:[#allocation2 + $0x8] sm:$0xff]  ;;  %s142_s9 = scalar_lea.hbm %s216_s2, 16 }
  0x27   :  { %v42_v2 = vld [vmem:[#allocation5] sm:$0xff]  ;;  %v43_v3 = vld [vmem:[#allocation5 + $0x8] sm:$0xff]  ;;  %p143_p2 = scmp.ne.s32.totalorder %s216_s2, %s142_s9  ;;  %p146_p3 = scmp.lt.u32.totalorder %s142_s9, %s216_s2 }
  0x28   :  { %v44_v4 = vsub.f32 %v40_v0, %v42_v2  ;;  %v45_v5 = vsub.f32 %v41_v1, %v43_v3 }
  0x29   :  { %p148_p4 = pnand %p146_p3, %p143_p2 }
  0x2a   :  { %v46_v6 = vmul.f32 %v44_v4, %v44_v4  ;;  %v47_v7 = vmul.f32 %v45_v5, %v45_v5  ;;  %v60_v8 = vand.u32 2147483647, %v44_v4  ;;  %v61_v9 = vand.u32 2147483647, %v45_v5 }
  0x2c   :  { %v48_v10 = vadd.f32 %v47_v7, %v46_v6  ;;  %v62_v11 = vadd.f32 %v61_v9, %v60_v8 }
  0x2e   :  { %49 = vadd.xlane.f32.xlu0 %v48_v10 }
  0x32   :  { %63 = vadd.xlane.f32.xlu0 %v62_v11 }
  0xbb   :  { %v50_v12 = vpop.xlane.xlu0 %49 }
  0xbc   :  { %v51_v13 = vrot.slane %v50_v12, 4 }
  0xbe   :  { %v52_v14 = vadd.f32 %v51_v13, %v50_v12 }
  0xbf   :  { %v64_v15 = vpop.xlane.xlu0 %63 }
  0xc0   :  { %v53_v16 = vrot.slane %v52_v14, 2  ;;  %v65_v17 = vrot.slane %v64_v15, 4 }
  0xc2   :  { %v66_v18 = vadd.f32 %v65_v17, %v64_v15  ;;  %v54_v19 = vadd.f32 %v53_v16, %v52_v14 }
  0xc4   :  { %v67_v20 = vrot.slane %v66_v18, 2  ;;  %v55_v21 = vrot.slane %v54_v19, 1 }
  0xc6   :  { %v68_v22 = vadd.f32 %v67_v20, %v66_v18  ;;  %v56_v23 = vadd.f32 %v55_v21, %v54_v19 }
  0xc8   :  { %89 = vpush %v56_v23  ;;  %v69_v24 = vrot.slane %v68_v22, 1 }
  0xca   :  { %v70_v25 = vadd.f32 %v69_v24, %v68_v22 }
  0xcc   :  { %91 = vpush %v70_v25 }
  0xf9   :  { %s90_s1 = spop %89 }
  0xfa   :  { %59 = sst [smem:[#allocation7]] %s90_s1 }
  0xfd   :  { %s92_s6 = spop %91 }
  0xfe   :  { %73 = sst [smem:[#allocation7 + $0x1]] %s92_s6 }
  0xff   :  { %151 = shalt.err (!%p148_p4)
}
 0x100   :  { %s162_s14 = smov [#allocation7]  }
 0x101   :  { %81 = dma.smem_to_hbm %s162_s14, 16, %s216_s2, [#allocation4]  }
 0x102   :  { %156 = dma.done.wait [#allocation4], 16  }
 0x103   :  { %157 = vsyncadd [#allocation4], 4294967280 }
 0x104   :  { %85 = sfence }
 0x105   :  { %86 = vsyncpa [#allocation3], 1 }
 0x106   :  { %87 = vsyncpa [#allocation6], 1 }
 0x107   :  { %88 = vsyncpa [#allocation4], 1 }

</bundles_post_ra>
